<compile_context>
chip_gen: v7x
topology: tpu7x:2x2x1
jax: 0.10.0
libtpu: 0.0.40
codegen_flags: <defaults>
</compile_context>

<pallas_src>
import jax
import jax.numpy as jnp
from jax.experimental import pallas as pl
from jax.experimental.pallas import tpu as pltpu

B, LS, LA, D, H = 8, 16, 16, 32, 32          # batch, smiles len, seq len, feat, hidden
GRAD_ACCUM_EVERY = 2
VALIDATE_EVERY = 250
STAT_ROWS, STAT_LANES = 8, 128               # lane-dense per-batch stats tile


# ----------------------------- helpers (verbatim semantics) -----------------
def accum_log(log, new_logs):
    for key, new_value in new_logs.items():
        old_value = log.get(key, 0.0)
        log[key] = old_value + new_value
    return log


def exists(val):
    return val is not None


def default(val, d):
    return val if exists(val) else d


# ----------------------------- Pallas kernel --------------------------------
def _batched_model_kernel(smiles_ref, aa_ref, label_ref,
                          w1_ref, b1_ref, w2t_ref, b2_ref, stats_ref):
    # sum-pool over the sequence axis (1/L mean scale folded into w1) -> XLU
    sm_sum = jnp.sum(smiles_ref[0], axis=1)                # (B, D)
    aa_sum = jnp.sum(aa_ref[0], axis=1)                    # (B, D)
    pooled = jnp.concatenate([sm_sum, aa_sum], axis=-1)    # (B, 2D)

    # single merged first-layer matmul (K = 2D) on the MXU
    h = jnp.dot(pooled, w1_ref[...],
                preferred_element_type=jnp.float32) + b1_ref[...]
    h = jnp.maximum(h, 0.0)                                # (B, H)

    # width-1 output projection as VPU multiply + lane reduce (keeps MXU free)
    preds = jnp.sum(h * w2t_ref[...], axis=-1, keepdims=True) + b2_ref[...]  # (B, 1)

    label = label_ref[0]                                   # (B, 1)

    # MSE loss (model.loss_fn)
    diff = preds - label
    loss = jnp.mean(diff * diff)

    # pearson_corr_coef(preds, label, dim=0) with eps guard, rsqrt on the EUP
    p_c = preds - jnp.mean(preds, axis=0, keepdims=True)
    y_c = label - jnp.mean(label, axis=0, keepdims=True)
    num = jnp.sum(p_c * y_c)
    den_sq = jnp.sum(p_c * p_c) * jnp.sum(y_c * y_c)
    corr = num * jax.lax.rsqrt(den_sq + 1e-12)

    # lane-dense (8,128) output tile: row 0 = loss, row 1 = corr (one full vst)
    row = jax.lax.broadcasted_iota(jnp.int32, (STAT_ROWS, STAT_LANES), 0)
    stats_ref[0] = jnp.where(row == 0, loss, jnp.where(row == 1, corr, 0.0))


@jax.jit
def fused_forward(smiles_stk, aa_stk, label_stk, w1, b1, w2t, b2):
    """One pallas_call over ALL mini-batches of a trainer step.

    smiles_stk: (N, B, LS, D), aa_stk: (N, B, LA, D), label_stk: (N, B, 1).
    Returns per-batch (loss, corr) vectors of shape (N,).
    """
    n = smiles_stk.shape[0]
    stats = pl.pallas_call(
        _batched_model_kernel,
        out_shape=jax.ShapeDtypeStruct((n, STAT_ROWS, STAT_LANES), jnp.float32),
        grid=(n,),
        in_specs=[
            pl.BlockSpec((1, B, LS, D), lambda i: (i, 0, 0, 0)),
            pl.BlockSpec((1, B, LA, D), lambda i: (i, 0, 0, 0)),
            pl.BlockSpec((1, B, 1), lambda i: (i, 0, 0)),
            # constant block index => weights stay resident in VMEM across grid
            pl.BlockSpec((2 * D, H), lambda i: (0, 0)),
            pl.BlockSpec((1, H), lambda i: (0, 0)),
            pl.BlockSpec((1, H), lambda i: (0, 0)),
            pl.BlockSpec((1, 1), lambda i: (0, 0)),
        ],
        out_specs=pl.BlockSpec((1, STAT_ROWS, STAT_LANES), lambda i: (i, 0, 0)),
        compiler_params=pltpu.CompilerParams(
            dimension_semantics=("parallel",)),   # 2 TCs on v7x split the batches
    )(smiles_stk, aa_stk, label_stk, w1, b1, w2t, b2)
    return stats[:, 0, 0], stats[:, 1, 0]


def prepare_params(w1s, w1a, b1, w2, b2):
    """Host-side, one-time: fold 1/L mean-pool scale into w1, merge & transpose."""
    w1 = jnp.concatenate([w1s / LS, w1a / LA], axis=0)     # (2D, H)
    w2t = w2.T                                             # (1, H)
    b2 = b2.reshape(1, 1)                                  # (1, 1)
    return (w1, b1, w2t, b2)


# ----------------------------- pure-JAX reference ----------------------------
def _ref_stats(smiles, aa_seq, label, w1s, w1a, b1, w2, b2):
    sm = smiles.mean(axis=1)
    ap = aa_seq.mean(axis=1)
    h = jnp.maximum(jnp.concatenate([sm, ap], -1)
                    @ jnp.concatenate([w1s, w1a], 0) + b1, 0.0)
    preds = h @ w2 + b2
    diff = preds - label
    loss = jnp.mean(diff * diff)
    p_c = preds - preds.mean(0, keepdims=True)
    y_c = label - label.mean(0, keepdims=True)
    corr = (p_c * y_c).sum() / jnp.sqrt((p_c * p_c).sum() * (y_c * y_c).sum())
    return loss, corr


# ----------------------------- Trainer.forward ------------------------------
def trainer_forward(steps, train_batches, valid_batches, prep_params,
                    grad_accum_every=GRAD_ACCUM_EVERY,
                    validate_every=VALIDATE_EVERY):
    """Reproduces Trainer.forward() log semantics with ONE fused pallas_call
    and ONE host sync per trainer step."""
    curr_step = int(steps)
    log = {}
    do_valid = (curr_step % validate_every == 0)

    # TODO(synk): dataloader iteration, loss.backward(), optimizer.step()/zero_grad(),
    # grad-norm clipping and torch.save checkpointing are host-side training
    # machinery with no Pallas equivalent; only the forward compute is kernelized.
    batches = list(train_batches) + (list(valid_batches) if do_valid else [])
    smiles_stk = jnp.stack([b[0] for b in batches])
    aa_stk = jnp.stack([b[1] for b in batches])
    label_stk = jnp.stack([b[2] for b in batches])

    losses, corrs = fused_forward(smiles_stk, aa_stk, label_stk, *prep_params)

    # single device->host transfer for the whole trainer step
    losses_h, corrs_h = jax.device_get((losses, corrs))

    for i in range(grad_accum_every):
        log = accum_log(log, {'loss': float(losses_h[i]) / grad_accum_every})

    if do_valid:
        for i in range(grad_accum_every):
            j = grad_accum_every + i
            log = accum_log(log, {
                'valid_loss': float(losses_h[j]) / grad_accum_every,
                'valid_correlation': float(corrs_h[j]) / grad_accum_every,
            })

    steps = steps + 1
    return log, steps


# ----------------------------- main ------------------------------------------
if __name__ == "__main__":
    key = jax.random.PRNGKey(0)
    keys = jax.random.split(key, 16)

    # deterministic "model" parameters
    w1s = jax.random.normal(keys[0], (D, H), jnp.float32) * 0.1
    w1a = jax.random.normal(keys[1], (D, H), jnp.float32) * 0.1
    b1 = jax.random.normal(keys[2], (1, H), jnp.float32) * 0.01
    w2 = jax.random.normal(keys[3], (H, 1), jnp.float32) * 0.1
    b2 = jax.random.normal(keys[4], (1, 1), jnp.float32) * 0.01
    prep_params = prepare_params(w1s, w1a, b1, w2, b2)

    def make_batch(k):
        k1, k2, k3 = jax.random.split(k, 3)
        smiles = jax.random.normal(k1, (B, LS, D), jnp.float32)
        aa_seq = jax.random.normal(k2, (B, LA, D), jnp.float32)
        label = jax.random.normal(k3, (B, 1), jnp.float32)
        return smiles, aa_seq, label

    train_batches = [make_batch(keys[5 + i]) for i in range(GRAD_ACCUM_EVERY)]
    valid_batches = [make_batch(keys[9 + i]) for i in range(GRAD_ACCUM_EVERY)]

    # run the fused kernel once directly (train batches only) and block on it
    sm_stk = jnp.stack([b[0] for b in train_batches])
    aa_stk = jnp.stack([b[1] for b in train_batches])
    lb_stk = jnp.stack([b[2] for b in train_batches])
    losses, corrs = fused_forward(sm_stk, aa_stk, lb_stk, *prep_params)
    jax.block_until_ready((losses, corrs))

    # correctness check vs pure-JAX reference (loose tol: MXU f32 path)
    ref_loss, ref_corr = _ref_stats(*train_batches[0], w1s, w1a, b1, w2, b2)
    assert jnp.allclose(losses[0], ref_loss, atol=2e-2, rtol=2e-2)
    assert jnp.allclose(corrs[0], ref_corr, atol=2e-2, rtol=2e-2)

    # full Trainer.forward() semantics (log accumulation, validation branch)
    steps = 0.0
    log, steps = trainer_forward(steps, train_batches, valid_batches, prep_params)
    assert set(log.keys()) == {'loss', 'valid_loss', 'valid_correlation'}
    assert steps == 1.0

    print("KERNEL_OK")
</pallas_src>

<mosaic_0001>
module attributes {stable_mosaic.version = 11 : i64} {
  func.func @_batched_model_kernel(%arg0: i32, %arg1: memref<1x8x16x32xf32, #tpu.memory_space<vmem>>, %arg2: memref<1x8x16x32xf32, #tpu.memory_space<vmem>>, %arg3: memref<1x8x1xf32, #tpu.memory_space<vmem>>, %arg4: memref<64x32xf32, #tpu.memory_space<vmem>>, %arg5: memref<1x32xf32, #tpu.memory_space<vmem>>, %arg6: memref<1x32xf32, #tpu.memory_space<vmem>>, %arg7: memref<1x1xf32, #tpu.memory_space<vmem>>, %arg8: memref<1x8x128xf32, #tpu.memory_space<vmem>>) attributes {dimension_semantics = [#tpu.dimension_semantics<parallel>], iteration_bounds = array<i64: 2>, scalar_prefetch = 0 : i64, scratch_operands = 0 : i64, tpu.core_type = #tpu.core_type<tc>, window_params = [{transform_indices = @transform_0, window_bounds = array<i64: 1, 8, 16, 32>}, {transform_indices = @transform_1, window_bounds = array<i64: 1, 8, 16, 32>}, {transform_indices = @transform_2, window_bounds = array<i64: 1, 8, 1>}, {pipeline_mode = #tpu.pipeline_mode<synchronous>, transform_indices = @transform_3, window_bounds = array<i64: 64, 32>}, {pipeline_mode = #tpu.pipeline_mode<synchronous>, transform_indices = @transform_4, window_bounds = array<i64: 1, 32>}, {pipeline_mode = #tpu.pipeline_mode<synchronous>, transform_indices = @transform_5, window_bounds = array<i64: 1, 32>}, {pipeline_mode = #tpu.pipeline_mode<synchronous>, transform_indices = @transform_6, window_bounds = array<i64: 1, 1>}, {transform_indices = @transform_7, window_bounds = array<i64: 1, 8, 128>}]} {
    %c0 = arith.constant 0 : index
    %c0_0 = arith.constant 0 : index
    %c0_1 = arith.constant 0 : index
    %c0_2 = arith.constant 0 : index
    %0 = vector.load %arg1[%c0, %c0_0, %c0_1, %c0_2] : memref<1x8x16x32xf32, #tpu.memory_space<vmem>>, vector<1x8x16x32xf32>
    %1 = vector.shape_cast %0 : vector<1x8x16x32xf32> to vector<8x16x32xf32>
    %cst = arith.constant dense<0.000000e+00> : vector<8x32xf32>
    %2 = vector.multi_reduction <add>, %1, %cst [1] : vector<8x16x32xf32> to vector<8x32xf32>
    %c0_3 = arith.constant 0 : index
    %c0_4 = arith.constant 0 : index
    %c0_5 = arith.constant 0 : index
    %c0_6 = arith.constant 0 : index
    %3 = vector.load %arg2[%c0_3, %c0_4, %c0_5, %c0_6] : memref<1x8x16x32xf32, #tpu.memory_space<vmem>>, vector<1x8x16x32xf32>
    %4 = vector.shape_cast %3 : vector<1x8x16x32xf32> to vector<8x16x32xf32>
    %cst_7 = arith.constant dense<0.000000e+00> : vector<8x32xf32>
    %5 = vector.multi_reduction <add>, %4, %cst_7 [1] : vector<8x16x32xf32> to vector<8x32xf32>
    %6 = tpu.concatenate %2, %5 in 1 : vector<8x32xf32>, vector<8x32xf32> -> vector<8x64xf32>
    %c0_8 = arith.constant 0 : index
    %c0_9 = arith.constant 0 : index
    %7 = vector.load %arg4[%c0_8, %c0_9] : memref<64x32xf32, #tpu.memory_space<vmem>>, vector<64x32xf32>
    %cst_10 = arith.constant dense<0.000000e+00> : vector<8x32xf32>
    %8 = tpu.matmul %6, %7, %cst_10 {dimension_numbers = #tpu.dot_dimension_numbers<[1], [0], [0], [1], [0, 0, 1, 1], [], []>} : vector<8x64xf32>, vector<64x32xf32>, vector<8x32xf32> -> vector<8x32xf32>
    %c0_11 = arith.constant 0 : index
    %c0_12 = arith.constant 0 : index
    %9 = vector.load %arg5[%c0_11, %c0_12] : memref<1x32xf32, #tpu.memory_space<vmem>>, vector<1x32xf32>
    %10 = vector.broadcast %9 : vector<1x32xf32> to vector<8x32xf32>
    %11 = arith.addf %8, %10 : vector<8x32xf32>
    %cst_13 = arith.constant 0.000000e+00 : f32
    %12 = vector.broadcast %cst_13 : f32 to vector<8x32xf32>
    %13 = arith.maximumf %11, %12 : vector<8x32xf32>
    %c0_14 = arith.constant 0 : index
    %c0_15 = arith.constant 0 : index
    %14 = vector.load %arg6[%c0_14, %c0_15] : memref<1x32xf32, #tpu.memory_space<vmem>>, vector<1x32xf32>
    %15 = vector.broadcast %14 : vector<1x32xf32> to vector<8x32xf32>
    %16 = arith.mulf %13, %15 : vector<8x32xf32>
    %cst_16 = arith.constant dense<0.000000e+00> : vector<8xf32>
    %17 = vector.multi_reduction <add>, %16, %cst_16 [1] : vector<8x32xf32> to vector<8xf32>
    %18 = vector.shape_cast %17 : vector<8xf32> to vector<8x1xf32>
    %c0_17 = arith.constant 0 : index
    %c0_18 = arith.constant 0 : index
    %19 = vector.load %arg7[%c0_17, %c0_18] : memref<1x1xf32, #tpu.memory_space<vmem>>, vector<1x1xf32>
    %20 = vector.broadcast %19 : vector<1x1xf32> to vector<8x1xf32>
    %21 = arith.addf %18, %20 : vector<8x1xf32>
    %c0_19 = arith.constant 0 : index
    %c0_20 = arith.constant 0 : index
    %c0_21 = arith.constant 0 : index
    %22 = vector.load %arg3[%c0_19, %c0_20, %c0_21] : memref<1x8x1xf32, #tpu.memory_space<vmem>>, vector<1x8x1xf32>
    %23 = vector.shape_cast %22 : vector<1x8x1xf32> to vector<8x1xf32>
    %24 = arith.subf %21, %23 : vector<8x1xf32>
    %25 = arith.mulf %24, %24 : vector<8x1xf32>
    %26 = vector.shape_cast %25 : vector<8x1xf32> to vector<1x8x1xf32>
    %cst_22 = arith.constant dense<0.000000e+00> : vector<1xf32>
    %27 = vector.multi_reduction <add>, %26, %cst_22 [1, 2] : vector<1x8x1xf32> to vector<1xf32>
    %28 = vector.shape_cast %27 : vector<1xf32> to vector<1x1x1xf32>
    %29 = vector.extract %28[0, 0, 0] : f32 from vector<1x1x1xf32>
    %cst_23 = arith.constant 8.000000e+00 : f32
    %30 = arith.divf %29, %cst_23 : f32
    %cst_24 = arith.constant dense<0.000000e+00> : vector<1xf32>
    %31 = vector.multi_reduction <add>, %21, %cst_24 [0] : vector<8x1xf32> to vector<1xf32>
    %32 = vector.shape_cast %31 : vector<1xf32> to vector<1x1xf32>
    %cst_25 = arith.constant 8.000000e+00 : f32
    %33 = vector.broadcast %cst_25 : f32 to vector<1x1xf32>
    %34 = arith.divf %32, %33 : vector<1x1xf32>
    %35 = vector.broadcast %34 : vector<1x1xf32> to vector<8x1xf32>
    %36 = arith.subf %21, %35 : vector<8x1xf32>
    %cst_26 = arith.constant dense<0.000000e+00> : vector<1xf32>
    %37 = vector.multi_reduction <add>, %23, %cst_26 [0] : vector<8x1xf32> to vector<1xf32>
    %38 = vector.shape_cast %37 : vector<1xf32> to vector<1x1xf32>
    %cst_27 = arith.constant 8.000000e+00 : f32
    %39 = vector.broadcast %cst_27 : f32 to vector<1x1xf32>
    %40 = arith.divf %38, %39 : vector<1x1xf32>
    %41 = vector.broadcast %40 : vector<1x1xf32> to vector<8x1xf32>
    %42 = arith.subf %23, %41 : vector<8x1xf32>
    %43 = arith.mulf %36, %42 : vector<8x1xf32>
    %44 = vector.shape_cast %43 : vector<8x1xf32> to vector<1x8x1xf32>
    %cst_28 = arith.constant dense<0.000000e+00> : vector<1xf32>
    %45 = vector.multi_reduction <add>, %44, %cst_28 [1, 2] : vector<1x8x1xf32> to vector<1xf32>
    %46 = vector.shape_cast %45 : vector<1xf32> to vector<1x1x1xf32>
    %47 = vector.extract %46[0, 0, 0] : f32 from vector<1x1x1xf32>
    %48 = arith.mulf %36, %36 : vector<8x1xf32>
    %49 = vector.shape_cast %48 : vector<8x1xf32> to vector<1x8x1xf32>
    %cst_29 = arith.constant dense<0.000000e+00> : vector<1xf32>
    %50 = vector.multi_reduction <add>, %49, %cst_29 [1, 2] : vector<1x8x1xf32> to vector<1xf32>
    %51 = vector.shape_cast %50 : vector<1xf32> to vector<1x1x1xf32>
    %52 = vector.extract %51[0, 0, 0] : f32 from vector<1x1x1xf32>
    %53 = arith.mulf %42, %42 : vector<8x1xf32>
    %54 = vector.shape_cast %53 : vector<8x1xf32> to vector<1x8x1xf32>
    %cst_30 = arith.constant dense<0.000000e+00> : vector<1xf32>
    %55 = vector.multi_reduction <add>, %54, %cst_30 [1, 2] : vector<1x8x1xf32> to vector<1xf32>
    %56 = vector.shape_cast %55 : vector<1xf32> to vector<1x1x1xf32>
    %57 = vector.extract %56[0, 0, 0] : f32 from vector<1x1x1xf32>
    %58 = arith.mulf %52, %57 : f32
    %cst_31 = arith.constant 9.99999996E-13 : f32
    %59 = arith.addf %58, %cst_31 : f32
    %60 = math.rsqrt %59 : f32
    %61 = arith.mulf %47, %60 : f32
    %62 = tpu.iota {dimensions = array<i32: 0>} : vector<8x128xi32>
    %c0_i32 = arith.constant 0 : i32
    %63 = vector.broadcast %c0_i32 : i32 to vector<8x128xi32>
    %64 = arith.cmpi eq, %62, %63 : vector<8x128xi32>
    %c1_i32 = arith.constant 1 : i32
    %65 = vector.broadcast %c1_i32 : i32 to vector<8x128xi32>
    %66 = arith.cmpi eq, %62, %65 : vector<8x128xi32>
    %cst_32 = arith.constant 0.000000e+00 : f32
    %67 = vector.broadcast %61 : f32 to vector<8x128xf32>
    %68 = vector.broadcast %cst_32 : f32 to vector<8x128xf32>
    %69 = arith.select %66, %67, %68 : vector<8x128xi1>, vector<8x128xf32>
    %70 = vector.broadcast %30 : f32 to vector<8x128xf32>
    %71 = arith.select %64, %70, %69 : vector<8x128xi1>, vector<8x128xf32>
    %c0_33 = arith.constant 0 : index
    %c0_34 = arith.constant 0 : index
    %c0_35 = arith.constant 0 : index
    %72 = vector.load %arg8[%c0_33, %c0_34, %c0_35] : memref<1x8x128xf32, #tpu.memory_space<vmem>>, vector<1x8x128xf32>
    %73 = vector.shape_cast %72 : vector<1x8x128xf32> to vector<8x128xf32>
    %74 = vector.shape_cast %71 : vector<8x128xf32> to vector<1x8x128xf32>
    tpu.vector_store %arg8[%c0_33, %c0_34, %c0_35], %74 {strides = array<i32>} : memref<1x8x128xf32, #tpu.memory_space<vmem>>, vector<1x8x128xf32>,
    return
  }
  func.func @transform_0(%arg0: i32) -> (i32, i32, i32, i32) {
    %c0_i32 = arith.constant 0 : i32
    %c0_i32_0 = arith.constant 0 : i32
    %c0_i32_1 = arith.constant 0 : i32
    %c0_i32_2 = arith.constant 0 : i32
    return %arg0, %c0_i32, %c0_i32_0, %c0_i32_1 : i32, i32, i32, i32
  }
  func.func @transform_1(%arg0: i32) -> (i32, i32, i32, i32) {
    %c0_i32 = arith.constant 0 : i32
    %c0_i32_0 = arith.constant 0 : i32
    %c0_i32_1 = arith.constant 0 : i32
    %c0_i32_2 = arith.constant 0 : i32
    return %arg0, %c0_i32, %c0_i32_0, %c0_i32_1 : i32, i32, i32, i32
  }
  func.func @transform_2(%arg0: i32) -> (i32, i32, i32) {
    %c0_i32 = arith.constant 0 : i32
    %c0_i32_0 = arith.constant 0 : i32
    %c0_i32_1 = arith.constant 0 : i32
    return %arg0, %c0_i32, %c0_i32_0 : i32, i32, i32
  }
  func.func @transform_3(%arg0: i32) -> (i32, i32) {
    %c0_i32 = arith.constant 0 : i32
    %c0_i32_0 = arith.constant 0 : i32
    %c0_i32_1 = arith.constant 0 : i32
    return %c0_i32, %c0_i32_0 : i32, i32
  }
  func.func @transform_4(%arg0: i32) -> (i32, i32) {
    %c0_i32 = arith.constant 0 : i32
    %c0_i32_0 = arith.constant 0 : i32
    %c0_i32_1 = arith.constant 0 : i32
    return %c0_i32, %c0_i32_0 : i32, i32
  }
  func.func @transform_5(%arg0: i32) -> (i32, i32) {
    %c0_i32 = arith.constant 0 : i32
    %c0_i32_0 = arith.constant 0 : i32
    %c0_i32_1 = arith.constant 0 : i32
    return %c0_i32, %c0_i32_0 : i32, i32
  }
  func.func @transform_6(%arg0: i32) -> (i32, i32) {
    %c0_i32 = arith.constant 0 : i32
    %c0_i32_0 = arith.constant 0 : i32
    %c0_i32_1 = arith.constant 0 : i32
    return %c0_i32, %c0_i32_0 : i32, i32
  }
  func.func @transform_7(%arg0: i32) -> (i32, i32, i32) {
    %c0_i32 = arith.constant 0 : i32
    %c0_i32_0 = arith.constant 0 : i32
    %c0_i32_1 = arith.constant 0 : i32
    return %arg0, %c0_i32, %c0_i32_0 : i32, i32, i32
  }
}

</mosaic_0001>

<bundles_post_ra>
// kernel: fused_forward.1
= control target key start
LH: loop header
LB: loop body
LE: loop exit
PB: predicated region body
PF: predicated region fallthrough
CT: control target
= control target key end

     0   :  { %s1451_s0 = inlined_call_operand.hbm [shape: f32[2,8,16,32], index: 0, kind: input, shape index: {}]   ;;  %s1452_s1 = inlined_call_operand.hbm [shape: f32[2,8,16,32], index: 1, kind: input, shape index: {}]   ;;  %s1453_s2 = inlined_call_operand.vmem [shape: f32[2,8,1], index: 2, kind: input, shape index: {}]   ;;  %s1454_s3 = inlined_call_operand.vmem [shape: f32[64,32], index: 3, kind: input, shape index: {}]   ;;  %s1455_s4 = inlined_call_operand.vmem [shape: f32[1,32], index: 4, kind: input, shape index: {}]   ;;  %s1456_s5 = inlined_call_operand.vmem [shape: f32[1,32], index: 5, kind: input, shape index: {}]   ;;  %s1457_s6 = inlined_call_operand.<no memory space> [shape: f32[1,1], index: 6, kind: input, shape index: {}]   ;;  %s1458_s7 = inlined_call_operand.vmem [shape: f32[2,8,128], index: 7, kind: output, shape index: {}]  }
   0x1   :  { %v12_v0 = vstv %s1457_s6 }
   0x2   :  { %13 = vst [vmem:[#allocation2] sm:$0x1] %v12_v0 }
   0x3   :  { %14 = vsyncpa [#allocation4], 0 }
   0x4   :  { %16 = vsyncpa [#allocation4 + $0x1], 0 }
   0x5   :  { %17 = vsyncpa [#allocation6], 0 }
   0x6   :  { %19 = vsyncpa [#allocation6 + $0x1], 0  ;;  %s1143_s26 = smov 0   ;;  %s1145_s27 = smov 0  }
   0x7   :  { %s1147_s28 = smov 0   ;;  %s1149_s29 = smov 0  }
   0x8 LB: > { %s1162_s6 = sadd.s32 4294967295, %s1090_s29   ;;  %s1165_s30 = sadd.s32 1, %s1090_s29   ;;  %s1090_s29 = sphi %s1149_s29, %s1468_s29   ;;  %s1086_s28 = sphi %s1147_s28, %s1467_s28   ;;  %s1082_s27 = sphi %s1145_s27, %s1466_s27   ;;  %s1078_s26 = sphi %s1143_s26, %s1465_s26  }
   0x9   : > { %s29_s8 = ssub.s32 %s1090_s29, %s1165_s30  ;;  %s32_s9 = sadd.s32 1, %s1086_s28 }
   0xa   : > { %p30_p0 = scmp.eq.s32.totalorder %s29_s8, 0  ;;  %p39_p1 = scmp.ne.s32.totalorder %s1086_s28, %s1082_s27 }
   0xb   : > { %p40_p2 = scmp.eq.s32.totalorder %s1090_s29, 0  ;;  %p45_p3 = scmp.ne.s32.totalorder %s1082_s27, %s1078_s26 }
   0xc   : > { %s1175_s10 = scalar_select %p30_p0, %s1086_s28, %s32_s9  }
   0xd   : > { %p41_p4 = por %p40_p2, %p39_p1  ;;  %p46_p5 = scmp.eq.s32.totalorder %s1162_s6, 0 }
   0xe   : > { %p951_p6 = scmp.lt.s32.totalorder %s1090_s29, 2  ;;  %s1184_s12 = sand.u32 1, %s1086_s28  }
   0xf   : > { %p1179_p7 = por %p46_p5, %p45_p3  ;;  %s871_s13 = sshll.u32 %s1184_s12, 7 }
  0x10   : > { %s888_s14 = sshll.u32 %s1090_s29, 11  ;;  %s247_s18 = scalar_lea.vmem [#allocation3], %s871_s13 }
  0x11   : > { %s1460_s11 = scalar_select %p1179_p7, 1, 0 }
  0x12   : > { %s1193_s17 = scalar_lea.hbm %s1451_s0, %s888_s14  ;;  %s254_s19 = sshll.u32 %s247_s18, 4  ;;  %s1197_s19 = int_to_ptr.vmem [resolvable:$true] %s254_s19 }
  0x13   : > { %p1199_p8 = pnand %p951_p6, %p41_p4  ;;  %s244_s21 = scalar_lea.sflag [#allocation4], %s1184_s12 }
  0x14   : > { %s992_s22 = scalar_lea.hbm %s1193_s17, 2048  ;;  %s997_s25 = scalar_lea.hbm %s1451_s0, 4096 }
  0x15   : > { %p993_p10 = scmp.ne.s32.totalorder %s1193_s17, %s992_s22  ;;  %p994_p11 = pneg %p1199_p8 }
  0x16   : > { %p998_p0 = scmp.lt.u32.totalorder %s1193_s17, %s1451_s0  ;;  %p999_p1 = scmp.lt.u32.totalorder %s997_s25, %s992_s22 }
  0x17   : > { %p995_p12 = pnand %p994_p11, %p993_p10  ;;  %p1001_p3 = scmp.lt.u32.totalorder %s992_s22, %s1193_s17 }
  0x18   : > { %p1000_p2 = por %p999_p1, %p998_p0 }
  0x19   : > { %p996_p13 = pneg %p995_p12 }
  0x1a   : > { %p1002_p4 = por %p1001_p3, %p1000_p2 }
  0x1c   : > { %p1003_p5 = pnand %p1002_p4, %p996_p13 }
  0x1e   : > { %1006 = shalt.err (!%p1003_p5)
}
  0x1f   : > { %s1007_s9 = scalar_lea.vmem %s1197_s19, 2048  ;;  %s1092_s15 = smov [#allocation3]  }
  0x20   : > { %p1008_p6 = scmp.ne.s32.totalorder %s1197_s19, %s1007_s9  ;;  %s1012_s16 = sshll.u32 %s1092_s15, 4  ;;  %s1013_s16 = int_to_ptr.vmem [resolvable:$false] %s1012_s16 }
  0x21   : > { %s1014_s18 = scalar_lea.vmem %s1013_s16, 4096  ;;  %p1015_p9 = scmp.lt.s32.totalorder %s1197_s19, %s1013_s16 }
  0x22   : > { %p1010_p10 = pnand %p1008_p6, %p994_p11  ;;  %p1016_p0 = scmp.lt.s32.totalorder %s1014_s18, %s1007_s9 }
  0x24   : > { %p1011_p12 = pneg %p1010_p10  ;;  %p1017_p1 = por %p1016_p0, %p1015_p9 }
  0x26   : > { %p1018_p2 = pnand %p1017_p1, %p1011_p12 }
  0x28   : > { %1021 = shalt.err (!%p1018_p2)
}
  0x29   : > { %s1093_s22 = smov 128   ;;  %s1094_s23 = smov 8  }
  0x2a   : > { %947 = dma.hbm_to_vmem [thread:$0]  (!%p1199_p8), %s1193_s17, 2048, %s1197_s19, %s244_s21, %s1093_s22, %s1093_s22, %s1094_s23  }
  0x2b   : > { %p290_p9 = scmp.lt.s32.totalorder %s1090_s29, 3  ;;  %s1241_s26 = scalar_lea.hbm %s1452_s1, %s888_s14 }
  0x2c   : > { %p1462_p13 = scmp.ge.s32.totalorder %s1090_s29, 1  ;;  %s268_s9 = scalar_lea.vmem [#allocation5], %s871_s13 }
  0x2d   : > { %s275_s15 = sshll.u32 %s268_s9, 4  ;;  %s265_s17 = scalar_lea.sflag [#allocation6], %s1184_s12  ;;  %s1251_s15 = int_to_ptr.vmem [resolvable:$true] %s275_s15 }
  0x2e   : > { %p1245_p3 = pnand %p1462_p13, %p290_p9  ;;  %s1022_s19 = scalar_lea.hbm %s1241_s26, 2048 }
  0x2f   : > { %p1023_p4 = scmp.ne.s32.totalorder %s1241_s26, %s1022_s19  ;;  %s1027_s21 = scalar_lea.hbm %s1452_s1, 4096 }
  0x30   : > { %p1028_p10 = scmp.lt.u32.totalorder %s1241_s26, %s1452_s1  ;;  %p1029_p12 = scmp.lt.u32.totalorder %s1027_s21, %s1022_s19 }
  0x31   : > { %p1025_p5 = pnand %p1023_p4, %p994_p11  ;;  %p1031_p1 = scmp.lt.u32.totalorder %s1022_s19, %s1241_s26 }
  0x32   : > { %p1030_p0 = por %p1029_p12, %p1028_p10 }
  0x33   : > { %p1026_p6 = pneg %p1025_p5 }
  0x34   : > { %p1032_p2 = por %p1031_p1, %p1030_p0 }
  0x36   : > { %p1033_p9 = pnand %p1032_p2, %p1026_p6 }
  0x38   : > { %1036 = shalt.err (!%p1033_p9)
}
  0x39   : > { %s1037_s13 = scalar_lea.vmem %s1251_s15, 2048  ;;  %s1095_s24 = smov [#allocation5]  }
  0x3a   : > { %p1038_p13 = scmp.ne.s32.totalorder %s1251_s15, %s1037_s13  ;;  %s1042_s25 = sshll.u32 %s1095_s24, 4  ;;  %s1043_s25 = int_to_ptr.vmem [resolvable:$false] %s1042_s25 }
  0x3b   : > { %s1044_s9 = scalar_lea.vmem %s1043_s25, 4096  ;;  %p1045_p7 = scmp.lt.s32.totalorder %s1251_s15, %s1043_s25 }
  0x3c   : > { %p1040_p4 = pnand %p1038_p13, %p994_p11  ;;  %p1046_p10 = scmp.lt.s32.totalorder %s1044_s9, %s1037_s13 }
  0x3e   : > { %p1041_p5 = pneg %p1040_p4  ;;  %p1047_p12 = por %p1046_p10, %p1045_p7 }
  0x40   : > { %p1048_p0 = pnand %p1047_p12, %p1041_p5 }
  0x42   : > { %1051 = shalt.err (!%p1048_p0)
}
  0x43   : > { %950 = dma.hbm_to_vmem [thread:$0]  (!%p1199_p8), %s1241_s26, 2048, %s1251_s15, %s265_s17, %s1093_s22, %s1093_s22, %s1094_s23  }
  0x44   : > { %294 = sbr.rel (%p1245_p3) target bundleno = 890 (0x37a), region = 48  ;;  %s296_s19 = sand.u32 (!%p1245_p3), 1, %s1082_s27  }
  0x45   : > { %s878_s29 = sshll.u32 (!%p1245_p3), %s296_s19, 7  ;;  %s297_s14 = scalar_lea.sflag (!%p1245_p3), [#allocation4], %s296_s19 }
  0x46   : > { %s1285_s21 = scalar_lea.vmem (!%p1245_p3), [#allocation3], %s878_s29  ;;  %p1464_p7 = scmp.ne.s32.totalorder (!%p1245_p3), %s1460_s11, 0 }
  0x4b   : > { %1069 = dma.done.wait (%p1464_p7), %s297_s14, 2048  }
  0x4c   : > { %1071 = vsyncadd (%p1464_p7), %s297_s14, 4294965248  ;;  %s306_s12 = scalar_lea.sflag [#allocation6], %s296_s19  ;;  %s1291_s20 = scalar_lea.vmem [#allocation5], %s878_s29 }
  0x4d   : > { %1073 = dma.done.wait (%p1464_p7), %s306_s12, 2048  }
  0x4e   : > { %1075 = vsyncadd (%p1464_p7), %s306_s12, 4294965248  ;;  %v1096_v1 = vmov 0.0|0.0   ;;  %vm372_vm0 = vcmask 261120   ;;  %v445_v2 = vld [vmem:[%s1291_s20] sm:$0xff]  ;;  %v446_v3 = vld [vmem:[%s1291_s20 + $0x8] sm:$0xff]  ;;  %vm541_vm1 = vcmask 1041409  }
  0x4f   : > { %918 = vmatprep.subr.bf16.mxu0 %v1096_v1  ;;  %v447_v4 = vld [vmem:[%s1291_s20 + $0x10] sm:$0xff]  ;;  %v448_v5 = vld [vmem:[%s1291_s20 + $0x18] sm:$0xff]  ;;  %v449_v6 = vld [vmem:[%s1291_s20 + $0x20] sm:$0xff]  ;;  %v461_v8 = vsel %vm372_vm0, %v445_v2, 0.0  ;;  %v462_v9 = vsel %vm372_vm0, %v446_v3, 0.0  ;;  %vm543_vm2 = vcmask 1042434  }
  0x50   : > { %v450_v7 = vld [vmem:[%s1291_s20 + $0x28] sm:$0xff]  ;;  %v470_v10 = vsel %vm372_vm0, %v447_v4, 0.0  ;;  %v451_v11 = vld [vmem:[%s1291_s20 + $0x30] sm:$0xff]  ;;  %v452_v12 = vld [vmem:[%s1291_s20 + $0x38] sm:$0xff]  ;;  %v463_v14 = vadd.f32 %v462_v9, %v461_v8  ;;  %v471_v15 = vsel %vm372_vm0, %v448_v5, 0.0  ;;  %v479_v16 = vsel %vm372_vm0, %v449_v6, 0.0 }
  0x51   : > { %v453_v13 = vld [vmem:[%s1291_s20 + $0x40] sm:$0xff]  ;;  %v480_v17 = vsel %vm372_vm0, %v450_v7, 0.0  ;;  %v454_v18 = vld [vmem:[%s1291_s20 + $0x48] sm:$0xff]  ;;  %v455_v19 = vld [vmem:[%s1291_s20 + $0x50] sm:$0xff]  ;;  %v472_v21 = vadd.f32 %v471_v15, %v470_v10  ;;  %v488_v23 = vsel %vm372_vm0, %v451_v11, 0.0  ;;  %v489_v24 = vsel %vm372_vm0, %v452_v12, 0.0 }
  0x52   : > { %v456_v20 = vld [vmem:[%s1291_s20 + $0x58] sm:$0xff]  ;;  %v481_v22 = vadd.f32 %v480_v17, %v479_v16  ;;  %v457_v25 = vld [vmem:[%s1291_s20 + $0x60] sm:$0xff]  ;;  %v464_v26 = vrot.slane %v463_v14, 4  ;;  %v490_v27 = vadd.f32 %v489_v24, %v488_v23  ;;  %v497_v28 = vsel %vm372_vm0, %v453_v13, 0.0  ;;  %v458_v30 = vld [vmem:[%s1291_s20 + $0x68] sm:$0xff]  ;;  %s1097_s12 = smov 32  }
  0x53   : > { %v498_v29 = vsel %vm372_vm0, %v454_v18, 0.0  ;;  %v459_v31 = vld [vmem:[%s1291_s20 + $0x70] sm:$0xff]  ;;  %v473_v32 = vrot.slane %v472_v21, 4  ;;  %v506_v35 = vsel %vm372_vm0, %v455_v19, 0.0  ;;  %v507_v38 = vsel %vm372_vm0, %v456_v20, 0.0  ;;  %v460_v40 = vld [vmem:[%s1291_s20 + $0x78] sm:$0xff] }
  0x54   : > { %v482_v33 = vrot.slane %v481_v22, 4  ;;  %v499_v34 = vadd.f32 %v498_v29, %v497_v28  ;;  %v465_v36 = vadd.f32 %v464_v26, %v463_v14  ;;  %v491_v37 = vrot.slane %v490_v27, 4  ;;  %v575_v6 = vld [vmem:[%s1454_s3] sm:$0xff]  ;;  %v576_v7 = vld [vmem:[%s1454_s3 + $0x8] sm:$0xff]  ;;  %v577_v12 = vld [vmem:[%s1454_s3 + $0x10] sm:$0xff]  ;;  %p348_p8 = scmp.lt.s32.totalorder %s1162_s6, 1 }
  0x55   : > { %v515_v39 = vsel %vm372_vm0, %v457_v25, 0.0  ;;  %v474_v41 = vadd.f32 %v473_v32, %v472_v21  ;;  %v508_v44 = vadd.f32 %v507_v38, %v506_v35  ;;  %v516_v47 = vsel %vm372_vm0, %v458_v30, 0.0  ;;  %v578_v13 = vld [vmem:[%s1454_s3 + $0x18] sm:$0xff]  ;;  %v579_v18 = vld [vmem:[%s1454_s3 + $0x20] sm:$0xff]  ;;  %v580_v19 = vld [vmem:[%s1454_s3 + $0x28] sm:$0xff] }
  0x56   : > { %v483_v42 = vadd.f32 %v482_v33, %v481_v22  ;;  %v500_v43 = vrot.slane %v499_v34, 4  ;;  %v466_v45 = vrot.slane %v465_v36, 2  ;;  %v492_v46 = vadd.f32 %v491_v37, %v490_v27  ;;  %v1351_v24 = vld [vmem:[%s1454_s3 + $0x30] sm:$0xff]  ;;  %v1356_v25 = vld [vmem:[%s1454_s3 + $0x38] sm:$0xff]  ;;  %v356_v26 = vld [vmem:[%s1285_s21] sm:$0xff]  ;;  %s1470_s6 = smov (!%p348_p8, %s1162_s6), 1 }
  0x57   : > { %v524_v48 = vsel %vm372_vm0, %v459_v31, 0.0  ;;  %vm545_vm3 = vcmask 1043459   ;;  %v475_v49 = vrot.slane %v474_v41, 2  ;;  %v509_v52 = vrot.slane %v508_v44, 4  ;;  %v357_v31 = vld [vmem:[%s1285_s21 + $0x8] sm:$0xff]  ;;  %v359_v37 = vld [vmem:[%s1285_s21 + $0x18] sm:$0xff] }
  0x58   : > { %v484_v50 = vrot.slane %v483_v42, 2  ;;  %v501_v51 = vadd.f32 %v500_v43, %v499_v34  ;;  %vm547_vm4 = vcmask 1044484   ;;  %v467_v53 = vadd.f32 %v466_v45, %v465_v36  ;;  %v358_v36 = vld [vmem:[%s1285_s21 + $0x10] sm:$0xff]  ;;  %s880_s23 = sshll.u32 %s1470_s6, 3 }
  0x59   : > { %v493_v54 = vrot.slane %v492_v46, 2  ;;  %v517_v55 = vadd.f32 %v516_v47, %v515_v39  ;;  %v525_v56 = vsel %vm372_vm0, %v460_v40, 0.0  ;;  %vm549_vm5 = vcmask 1045509   ;;  %v362_v47 = vld [vmem:[%s1285_s21 + $0x30] sm:$0xff]  ;;  %s351_s15 = scalar_lea.vmem %s1453_s2, %s880_s23 }
  0x5a   : > { %v476_v57 = vadd.f32 %v475_v49, %v474_v41  ;;  %v485_v58 = vadd.f32 %v484_v50, %v483_v42  ;;  %v502_v59 = vrot.slane %v501_v51, 2  ;;  %v510_v60 = vadd.f32 %v509_v52, %v508_v44  ;;  %v360_v41 = vld [vmem:[%s1285_s21 + $0x20] sm:$0xff] }
  0x5b   : > { %v468_v61 = vrot.slane %v467_v53, 1  ;;  %v494_v62 = vadd.f32 %v493_v54, %v492_v46  ;;  %v518_v63 = vrot.slane %v517_v55, 4  ;;  %v526_v0 = vadd.f32 %v525_v56, %v524_v48  ;;  %v361_v46 = vld [vmem:[%s1285_s21 + $0x28] sm:$0xff]  ;;  %v363_v48 = vld [vmem:[%s1285_s21 + $0x38] sm:$0xff]  ;;  %v364_v56 = vld [vmem:[%s1285_s21 + $0x40] sm:$0xff] }
  0x5c   : > { %v477_v2 = vrot.slane %v476_v57, 1  ;;  %v486_v3 = vrot.slane %v485_v58, 1  ;;  %v503_v4 = vadd.f32 %v502_v59, %v501_v51  ;;  %v511_v5 = vrot.slane %v510_v60, 2 }
  0x5d   : > { %vm551_vm6 = vcmask 1046534   ;;  %v469_v8 = vadd.f32 %v468_v61, %v467_v53  ;;  %v495_v9 = vrot.slane %v494_v62, 1  ;;  %v519_v10 = vadd.f32 %v518_v63, %v517_v55 }
  0x5e   : > { %v527_v11 = vrot.slane %v526_v0, 4  ;;  %v478_v14 = vadd.f32 %v477_v2, %v476_v57  ;;  %v487_v15 = vadd.f32 %v486_v3, %v485_v58  ;;  %v504_v16 = vrot.slane %v503_v4, 1  ;;  %v365_v57 = vld [vmem:[%s1285_s21 + $0x48] sm:$0xff]  ;;  %v366_v3 = vld [vmem:[%s1285_s21 + $0x50] sm:$0xff] }
  0x5f   : > { %v512_v17 = vadd.f32 %v511_v5, %v510_v60  ;;  %vm553_vm7 = vcmask 1047559   ;;  %v496_v20 = vadd.f32 %v495_v9, %v494_v62  ;;  %v520_v21 = vrot.slane %v519_v10, 2 }
  0x60   : > { %v528_v22 = vadd.f32 %v527_v11, %v526_v0  ;;  %v919_v23 = vpack.c.bf16 %v576_v7, %v575_v6  ;;  %v505_v27 = vadd.f32 %v504_v16, %v503_v4  ;;  %v564_v29 = vsel %vm541_vm1, %v478_v14, %v469_v8  ;;  %v367_v4 = vld [vmem:[%s1285_s21 + $0x58] sm:$0xff] }
  0x61   : > { %v513_v28 = vrot.slane %v512_v17, 1  ;;  %v922_v30 = vpack.c.bf16 %v578_v13, %v577_v12  ;;  %v521_v32 = vadd.f32 %v520_v21, %v519_v10  ;;  %v565_v34 = vsel %vm543_vm2, %v487_v15, %v564_v29  ;;  %v368_v12 = vld [vmem:[%s1285_s21 + $0x60] sm:$0xff]  ;;  %v369_v13 = vld [vmem:[%s1285_s21 + $0x68] sm:$0xff]  ;;  %v370_v21 = vld [vmem:[%s1285_s21 + $0x70] sm:$0xff] }
  0x62   : > { %v529_v33 = vrot.slane %v528_v22, 2  ;;  %920 = vmatpush3.bf16.msra.mxu0 %v919_v23  ;;  %v925_v35 = vpack.c.bf16 %v580_v19, %v579_v18  ;;  %v566_v39 = vsel %vm545_vm3, %v496_v20, %v565_v34  ;;  %v928_v40 = vpack.c.bf16 %v1356_v25, %v1351_v24 }
  0x63   : > { %v514_v38 = vadd.f32 %v513_v28, %v512_v17  ;;  %921 = vmatprep.subr.bf16.mxu0 %v1096_v1  ;;  %v373_v42 = vsel %vm372_vm0, %v356_v26, 0.0  ;;  %v522_v43 = vrot.slane %v521_v32, 1  ;;  %v567_v45 = vsel %vm547_vm4, %v505_v27, %v566_v39 }
  0x64   : > { %v530_v44 = vadd.f32 %v529_v33, %v528_v22  ;;  %v374_v49 = vsel %vm372_vm0, %v357_v31, 0.0  ;;  %v382_v52 = vsel %vm372_vm0, %v358_v36, 0.0  ;;  %v383_v53 = vsel %vm372_vm0, %v359_v37, 0.0 }
  0x65   : > { %v568_v50 = vsel %vm549_vm5, %v514_v38, %v567_v45  ;;  %v375_v51 = vadd.f32 %v374_v49, %v373_v42  ;;  %v523_v54 = vadd.f32 %v522_v43, %v521_v32  ;;  %v384_v58 = vadd.f32 %v383_v53, %v382_v52 }
  0x66   : > { %v531_v55 = vrot.slane %v530_v44, 1  ;;  %923 = vmatpush3.bf16.msra.mxu0 %v922_v30  ;;  %v391_v59 = vsel %vm372_vm0, %v360_v41, 0.0  ;;  %v392_v61 = vsel %vm372_vm0, %v361_v46, 0.0  ;;  %v400_v62 = vsel %vm372_vm0, %v362_v47, 0.0  ;;  %v371_v30 = vld [vmem:[%s1285_s21 + $0x78] sm:$0xff]  ;;  %s355_s21 = scalar_lea.vmem %s1458_s7, %s880_s23 }
  0x67   : > { %924 = vmatprep.subr.bf16.mxu0 %v1096_v1  ;;  %v376_v60 = vrot.slane %v375_v51, 4  ;;  %v401_v63 = vsel %vm372_vm0, %v363_v48, 0.0  ;;  %v569_v2 = vsel %vm551_vm6, %v523_v54, %v568_v50  ;;  %v385_v5 = vrot.slane %v384_v58, 4 }
  0x68   : > { %v532_v0 = vadd.f32 %v531_v55, %v530_v44  ;;  %v393_v6 = vadd.f32 %v392_v61, %v391_v59  ;;  %v402_v8 = vadd.f32 %v401_v63, %v400_v62  ;;  %v409_v9 = vsel %vm372_vm0, %v364_v56, 0.0 }
  0x69   : > { %v377_v7 = vadd.f32 %v376_v60, %v375_v51  ;;  %v410_v10 = vsel %vm372_vm0, %v365_v57, 0.0  ;;  %v386_v14 = vadd.f32 %v385_v5, %v384_v58  ;;  %v418_v19 = vsel %vm372_vm0, %v366_v3, 0.0 }
  0x6a   : > { %v570_v11 = vsel %vm553_vm7, %v532_v0, %v569_v2  ;;  %926 = vmatpush3.bf16.msra.mxu0 %v925_v35  ;;  %v394_v15 = vrot.slane %v393_v6, 4  ;;  %v411_v16 = vadd.f32 %v410_v10, %v409_v9  ;;  %v403_v18 = vrot.slane %v402_v8, 4 }
  0x6b   : > { %571 = vrot.lane.b32.xlu0 %v570_v11, %s1097_s12  ;;  %927 = vmatprep.subr.bf16.mxu0 %v1096_v1  ;;  %v378_v17 = vrot.slane %v377_v7, 2  ;;  %v419_v20 = vsel %vm372_vm0, %v367_v4, 0.0  ;;  %v387_v22 = vrot.slane %v386_v14, 2  ;;  %v427_v28 = vsel %vm372_vm0, %v368_v12, 0.0 }
  0x6c   : > { %v395_v23 = vadd.f32 %v394_v15, %v393_v6  ;;  %v412_v24 = vrot.slane %v411_v16, 4  ;;  %v420_v25 = vadd.f32 %v419_v20, %v418_v19  ;;  %v404_v27 = vadd.f32 %v403_v18, %v402_v8 }
  0x6d   : > { %v379_v26 = vadd.f32 %v378_v17, %v377_v7  ;;  %v428_v29 = vsel %vm372_vm0, %v369_v13, 0.0  ;;  %v388_v1 = vadd.f32 %v387_v22, %v386_v14  ;;  %v436_v37 = vsel %vm372_vm0, %v370_v21, 0.0  ;;  %v882_v17 = vld [vmem:[%s1455_s4] ss:$0 sm:$0xff] }
  0x6e   : > { %929 = vmatpush3.bf16.msra.mxu0 %v928_v40  ;;  %v396_v31 = vrot.slane %v395_v23, 2  ;;  %v413_v32 = vadd.f32 %v412_v24, %v411_v16  ;;  %v421_v33 = vrot.slane %v420_v25, 4  ;;  %v405_v35 = vrot.slane %v404_v27, 2  ;;  %v884_v21 = vld [vmem:[%s1456_s5] ss:$0 sm:$0xff] }
  0x6f   : > { %v380_v34 = vrot.slane %v379_v26, 1  ;;  %v429_v36 = vadd.f32 %v428_v29, %v427_v28  ;;  %v389_v38 = vrot.slane %v388_v1, 1  ;;  %v437_v46 = vsel %vm372_vm0, %v371_v30, 0.0  ;;  %v885_v30 = vld [vmem:[#allocation2] ss:$0 sm:$0xff] }
  0x70   : > { %v397_v39 = vadd.f32 %v396_v31, %v395_v23  ;;  %v414_v41 = vrot.slane %v413_v32, 2  ;;  %v422_v42 = vadd.f32 %v421_v33, %v420_v25  ;;  %v406_v44 = vadd.f32 %v405_v35, %v404_v27  ;;  %v684_v25 = vld [vmem:[%s351_s15] sm:$0xff] }
  0x71   : > { %v381_v43 = vadd.f32 %v380_v34, %v379_v26  ;;  %v430_v45 = vrot.slane %v429_v36, 4  ;;  %v390_v40 = vadd.f32 %v389_v38, %v388_v1  ;;  %v438_v52 = vadd.f32 %v437_v46, %v436_v37 }
  0x72   : > { %v398_v47 = vrot.slane %v397_v39, 1  ;;  %v415_v48 = vadd.f32 %v414_v41, %v413_v32  ;;  %v423_v49 = vrot.slane %v422_v42, 2  ;;  %v407_v50 = vrot.slane %v406_v44, 1 }
  0x73   : > { %v431_v51 = vadd.f32 %v430_v45, %v429_v36  ;;  %v542_v56 = vsel %vm541_vm1, %v390_v40, %v381_v43  ;;  %v439_v59 = vrot.slane %v438_v52, 4  ;;  %vm1098_vm8 = vmmov 0  }
  0x74   : > { %v399_v53 = vadd.f32 %v398_v47, %v397_v39  ;;  %v416_v54 = vrot.slane %v415_v48, 1  ;;  %v424_v55 = vadd.f32 %v423_v49, %v422_v42  ;;  %v408_v57 = vadd.f32 %v407_v50, %v406_v44 }
  0x75   : > { %v432_v58 = vrot.slane %v431_v51, 2  ;;  %v1099_v63 = vmov 0.0   ;;  %v440_v2 = vadd.f32 %v439_v59, %v438_v52  ;;  %vm590_vm9 = vcmask 523264  }
  0x76   : > { %v417_v60 = vadd.f32 %v416_v54, %v415_v48  ;;  %v425_v61 = vrot.slane %v424_v55, 1  ;;  %v544_v62 = vsel %vm543_vm2, %v399_v53, %v542_v56  ;;  %915 = vmatprep.mubr.msk.f32.mxu0 %vm1098_vm8, %v1099_v63  ;;  %vm687_vm10 = vcmask 7168  }
  0x77   : > { %v433_v0 = vadd.f32 %v432_v58, %v431_v51  ;;  %v546_v3 = vsel %vm545_vm3, %v408_v57, %v544_v62  ;;  %v441_v7 = vrot.slane %v440_v2, 2  ;;  %v711_v26 = vsel %vm687_vm10, %v684_v25, 0.0 }
  0x78   : > { %v426_v4 = vadd.f32 %v425_v61, %v424_v55  ;;  %v548_v5 = vsel %vm547_vm4, %v417_v60, %v546_v3  ;;  %v712_v27 = vrot.slane %v711_v26, 4 }
  0x79   : > { %v434_v6 = vrot.slane %v433_v0, 1  ;;  %v442_v10 = vadd.f32 %v441_v7, %v440_v2 }
  0x7a   : > { %v550_v8 = vsel %vm549_vm5, %v426_v4, %v548_v5  ;;  %v713_v28 = vadd.f32 %v712_v27, %v711_v26 }
  0x7b   : > { %v435_v9 = vadd.f32 %v434_v6, %v433_v0  ;;  %v443_v11 = vrot.slane %v442_v10, 1 }
  0x7c   : > { %v714_v29 = vrot.slane %v713_v28, 2 }
  0x7d   : > { %v552_v12 = vsel %vm551_vm6, %v435_v9, %v550_v8  ;;  %v444_v13 = vadd.f32 %v443_v11, %v442_v10 }
  0x7e   : > { %v715_v31 = vadd.f32 %v714_v29, %v713_v28 }
  0x7f   : > { %v554_v14 = vsel %vm553_vm7, %v444_v13, %v552_v12 }
  0x80   : > { %v716_v36 = vrot.slane %v715_v31, 1 }
  0x82   : > { %v717_v42 = vadd.f32 %v716_v36, %v715_v31 }
  0x84   : > { %v718_v45 = vmul.f32 0.125, %v717_v42 }
  0x86   : > { %v719_v47 = vsub.f32 %v684_v25, %v718_v45 }
  0x88   : > { %v742_v52 = vmul.f32 %v719_v47, %v719_v47 }
  0x8a   : > { %v743_v54 = vsel %vm687_vm10, %v742_v52, 0.0 }
  0xdd   : > { %v572_v15 = vpop.permute.xlu0 %571 }
  0xde   : > { %v574_v16 = vsel %vm372_vm0, %v554_v14, %v572_v15 }
  0xdf   : > { %916 = vmatmul.mubr.msk.f32.vlgmr.msra.gmra.mrb[0].mxu0 %vm590_vm9, %v574_v16 }
 0x1b2   : > { %v660_v18 = vpop.f32.mrb[0].mxu0 }
 0x1b3   : > { %v661_v19 = vadd.f32 %v882_v17, %v660_v18  ;;  %v917_v20 = vpop.f32.mrb[1].mxu0 }
 0x1b5   : > { %v664_v22 = vmax.f32 %v661_v19, 0.0 }
 0x1b7   : > { %v672_v23 = vmul.f32 %v884_v21, %v664_v22  ;;  %v759_v22 = vlaneseq }
 0x1b9   : > { %v673_v24 = vsel %vm372_vm0, %v672_v23, 0.0  ;;  %v760_v23 = vshrl.u32 %v759_v22, 7 }
 0x1ba   : > { %674 = vadd.xlane.f32.xlu0 %v673_v24 }
 0x1bb   : > { %vm762_vm11 = vcmp.eq.s32.totalorder %v760_v23, 1  ;;  %vm761_vm12 = vcmp.eq.s32.totalorder %v760_v23, 0 }
 0x247   : > { %v675_v1 = vpop.xlane.xlu0 %674 }
 0x248   : > { %v683_v32 = vadd.f32 %v885_v30, %v675_v1 }
 0x24a   : > { %v701_v33 = vsel %vm687_vm10, %v683_v32, 0.0  ;;  %v685_v34 = vsub.f32 %v683_v32, %v684_v25 }
 0x24b   : > { %v702_v35 = vrot.slane %v701_v33, 4 }
 0x24c   : > { %v686_v37 = vmul.f32 %v685_v34, %v685_v34 }
 0x24d   : > { %v703_v38 = vadd.f32 %v702_v35, %v701_v33 }
 0x24e   : > { %v688_v39 = vsel %vm687_vm10, %v686_v37, 0.0 }
 0x24f   : > { %v704_v41 = vrot.slane %v703_v38, 2  ;;  %689 = vadd.xlane.f32.xlu1 %v688_v39 }
 0x251   : > { %v705_v43 = vadd.f32 %v704_v41, %v703_v38 }
 0x253   : > { %v706_v44 = vrot.slane %v705_v43, 1 }
 0x255   : > { %v707_v46 = vadd.f32 %v706_v44, %v705_v43 }
 0x257   : > { %v709_v40 = vmul.f32 0.125, %v707_v46 }
 0x259   : > { %v710_v48 = vsub.f32 %v683_v32, %v709_v40 }
 0x25b   : > { %v720_v49 = vmul.f32 %v719_v47, %v710_v48  ;;  %v731_v51 = vmul.f32 %v710_v48, %v710_v48 }
 0x25d   : > { %v721_v50 = vsel %vm687_vm10, %v720_v49, 0.0  ;;  %v732_v53 = vsel %vm687_vm10, %v731_v51, 0.0 }
 0x25e   : > { %722 = vadd.xlane.f32.xlu1 %v721_v50 }
 0x262   : > { %733 = vadd.xlane.f32.xlu1 %v732_v53 }
 0x266   : > { %744 = vadd.xlane.f32.xlu1 %v743_v54 }
 0x2dc   : > { %v690_v55 = vpop.xlane.xlu1 %689 }
 0x2dd   : > { %v691_v56 = vrot.slane %v690_v55, 4 }
 0x2df   : > { %v692_v57 = vadd.f32 %v691_v56, %v690_v55 }
 0x2e1   : > { %v693_v58 = vrot.slane %v692_v57, 2 }
 0x2e3   : > { %v694_v59 = vadd.f32 %v693_v58, %v692_v57 }
 0x2e5   : > { %v695_v60 = vrot.slane %v694_v59, 1 }
 0x2e7   : > { %v696_v61 = vadd.f32 %v695_v60, %v694_v59 }
 0x2e9   : > { %930 = vpush %v696_v61 }
 0x2eb   : > { %v723_v62 = vpop.xlane.xlu1 %722 }
 0x2ec   : > { %v724_v63 = vrot.slane %v723_v62, 4 }
 0x2ee   : > { %v725_v0 = vadd.f32 %v724_v63, %v723_v62 }
 0x2ef   : > { %v734_v2 = vpop.xlane.xlu1 %733 }
 0x2f0   : > { %v726_v3 = vrot.slane %v725_v0, 2  ;;  %v735_v4 = vrot.slane %v734_v2, 4 }
 0x2f2   : > { %v736_v5 = vadd.f32 %v735_v4, %v734_v2  ;;  %v727_v6 = vadd.f32 %v726_v3, %v725_v0 }
 0x2f3   : > { %v745_v7 = vpop.xlane.xlu1 %744 }
 0x2f4   : > { %v737_v8 = vrot.slane %v736_v5, 2  ;;  %v746_v9 = vrot.slane %v745_v7, 4  ;;  %v728_v10 = vrot.slane %v727_v6, 1 }
 0x2f6   : > { %v747_v11 = vadd.f32 %v746_v9, %v745_v7  ;;  %v729_v12 = vadd.f32 %v728_v10, %v727_v6  ;;  %v738_v13 = vadd.f32 %v737_v8, %v736_v5 }
 0x2f8   : > { %v748_v14 = vrot.slane %v747_v11, 2  ;;  %932 = vpush %v729_v12  ;;  %v739_v15 = vrot.slane %v738_v13, 1 }
 0x2fa   : > { %v749_v16 = vadd.f32 %v748_v14, %v747_v11  ;;  %v740_v17 = vadd.f32 %v739_v15, %v738_v13 }
 0x2fc   : > { %934 = vpush %v740_v17  ;;  %v750_v18 = vrot.slane %v749_v16, 1 }
 0x2fe   : > { %v751_v19 = vadd.f32 %v750_v18, %v749_v16 }
 0x300   : > { %936 = vpush %v751_v19 }
 0x31a   : > { %s931_s17 = spop %930 }
 0x31b   : > { %s700_s9 = smul.f32 0.125, %s931_s17 }
 0x31d   : > { %v765_v25 = vstv %s700_s9 }
 0x329   : > { %s933_s16 = spop %932 }
 0x32d   : > { %s935_s18 = spop %934 }
 0x331   : > { %s937_s13 = spop %936 }
 0x332   : > { %s753_s24 = smul.f32 %s937_s13, %s935_s18 }
 0x334   : > { %s754_s25 = sadd.f32 1e-12, %s753_s24 }
 0x336   : > { %v755_v20 = vstv %s754_s25 }
 0x337   : > { %990 = vrsqrt.f32 %v755_v20 }
 0x341   : > { %v991_v21 = vpop.eup %990 }
 0x342   : > { %938 = vpush %v991_v21 }
 0x373   : > { %s939_s19 = spop %938 }
 0x374   : > { %s758_s29 = smul.f32 %s939_s19, %s933_s16 }
 0x376   : > { %v763_v24 = vstv %s758_s29 }
 0x377   : > { %v764_v26 = vsel %vm762_vm11, %v763_v24, 0.0 }
 0x378   : > { %v766_v27 = vsel %vm761_vm12, %v765_v25, %v764_v26 }
 0x379   : > { %767 = vst [vmem:[%s355_s21] sm:$0xff] %v766_v27 }
 0x37a PF: > { %p22_p11 = scmp.ge.s32.totalorder %s1165_s30, 4   ;;  %s1465_s26 = smov %s1082_s27 }
 0x37b   : > { %s1466_s27 = smov %s1086_s28  ;;  %s1467_s28 = smov %s1175_s10 }
 0x37c   : > { %s1468_s29 = smov %s1165_s30  ;;  %24 = sbr.rel (!%p22_p11) target bundleno = 8 (0x8), region = 104 }
 0x383   :  { %787 = vsyncpa [#allocation4], 1 }
 0x384   :  { %789 = vsyncpa [#allocation4 + $0x1], 1 }
 0x385   :  { %790 = vsyncpa [#allocation6], 1 }
 0x386   :  { %792 = vsyncpa [#allocation6 + $0x1], 1 }

</bundles_post_ra>
